<compile_context>
chip_gen: v7x
topology: tpu7x:2x2x1
jax: 0.10.0
libtpu: 0.0.40
codegen_flags: <defaults>
</compile_context>

<pallas_src>
import functools

import jax
import jax.numpy as jnp
import numpy as np
from jax.experimental import pallas as pl
from jax.experimental.pallas import tpu as pltpu


def _codebook_kernel(wt_ref, x_ref, o_ref):
    # wt_ref: (D, C)      codebook, pre-transposed, constant across the grid
    # x_ref : (Bn, C, T)  Bn batch rows x T flattened-spatial columns
    # o_ref : (Bn, D, T)
    w = wt_ref[...]
    for b in range(x_ref.shape[0]):        # small static unroll over the batch tile
        o_ref[b] = jnp.dot(
            w, x_ref[b], preferred_element_type=jnp.float32
        ).astype(o_ref.dtype)


def _round_down_128(v):
    return max(128, (v // 128) * 128)


def _largest_divisor_leq(n, cap):
    cap = max(1, min(n, cap))
    for d in range(cap, 0, -1):
        if n % d == 0:
            return d
    return 1


@functools.lru_cache(maxsize=None)
def _vmem_limit_bytes():
    """Per-generation scoped-VMEM limit: ~60% of physical VMEM, capped at 64 MiB.

    v5e/v6e (128 MiB physical) -> 64 MiB;  v7x (64 MiB physical) -> ~38 MiB.
    """
    try:
        cap = int(pltpu.get_tpu_info().vmem_capacity_bytes)
    except Exception:
        cap = 64 << 20  # conservative fallback: assume the smallest (v7x-class) VMEM
    return min(64 << 20, int(cap * 0.6))


def _plan_tiles(N, C, D, HW, in_isz, out_isz, w_isz, vmem_limit):
    """Pick (Bn, T): batch rows per block and spatial (lane) columns per block."""
    # Honest budget for the double-buffered (x, out) blocks: reserve both
    # pipeline copies of the (D, C) codebook plus ~2 MiB compiler scratch.
    # (pl.Buffered(1) on the weight could reclaim one copy for huge codebooks;
    # the budget below already accounts for both, so this is only headroom.)
    budget = max(vmem_limit - 2 * D * C * w_isz - (2 << 20), 2 << 20)
    per_col = 2 * (C * in_isz + D * out_isz)   # double-buffered in+out, per column
    max_cols = max(128, budget // per_col)

    # Spatial tile T: either the full extent (always a legal last-dim block) or
    # the largest multiple of 128 that fits; grid = cdiv(HW, T) masks the tail.
    if HW <= max_cols:
        T = HW
    else:
        T = _round_down_128(max_cols)
    if N == 1 and T >= HW and HW >= 256:
        # Keep >= 2 spatial grid steps so both v7x TensorCores get work.
        T = _round_down_128(-(-HW // 2))

    # Batch tile Bn: when the spatial extent is small, fuse several batch rows
    # per block (fewer grid steps / larger DMAs), while keeping >= 2 batch
    # steps for the two TensorCores and bounding the in-kernel unroll.
    Bn = 1
    if N > 1 and T == HW and HW <= 512:
        row_bytes = max(1, per_col * HW)
        cap_rows = min(budget // row_bytes, max(1, N // 2), 8)
        Bn = _largest_divisor_leq(N, int(cap_rows))
    return Bn, T


def codebook_pallas_wt(x, weight_t, out_dtype=None):
    """x: (N, C, H, W); weight_t: (embed_dim, num_embed) == weight.T.

    Returns (N, embed_dim, H, W), matching
        x.permute(0, 2, 3, 1) @ weight  -> permute(0, 3, 1, 2).
    """
    N, C, H, W = x.shape
    D, Cw = weight_t.shape
    assert C == Cw, f"channel dim {C} must equal num_embed {Cw}"

    HW = H * W
    xr = x.reshape(N, C, HW)              # contiguous reshape: metadata only
    if out_dtype is None:
        out_dtype = jnp.result_type(x.dtype, weight_t.dtype)   # PyTorch promotion

    vmem_limit = _vmem_limit_bytes()
    Bn, T = _plan_tiles(
        N, C, D, HW,
        jnp.dtype(x.dtype).itemsize,
        jnp.dtype(out_dtype).itemsize,
        jnp.dtype(weight_t.dtype).itemsize,
        vmem_limit,
    )
    grid = (pl.cdiv(N, Bn), pl.cdiv(HW, T))

    out = pl.pallas_call(
        _codebook_kernel,
        out_shape=jax.ShapeDtypeStruct((N, D, HW), out_dtype),
        grid=grid,
        in_specs=[
            # Codebook: constant block index -> DMA'd once, stays resident.
            pl.BlockSpec((D, C), lambda n, t: (0, 0)),
            pl.BlockSpec((Bn, C, T), lambda n, t: (n, 0, t)),
        ],
        out_specs=pl.BlockSpec((Bn, D, T), lambda n, t: (n, 0, t)),
        compiler_params=pltpu.CompilerParams(
            dimension_semantics=("parallel", "parallel"),
            vmem_limit_bytes=int(vmem_limit),
        ),
    )(weight_t, xr)

    return out.reshape(N, D, H, W)        # contiguous reshape: metadata only


def codebook_pallas(x, weight, out_dtype=None):
    """Convenience entry taking the (num_embed, embed_dim) weight directly."""
    return codebook_pallas_wt(x, jnp.asarray(weight).T, out_dtype=out_dtype)


def codebook_reference(x, weight):
    # Pure-JAX reference of the PyTorch forward.
    return jnp.einsum("nchw,cd->ndhw", x, weight)


class CodebookPallas:
    """Mirror of the PyTorch Codebook module (frozen embedding matmul over channels)."""

    def __init__(self, weight, out_dtype=None):
        weight = jnp.asarray(weight)
        self.num_embed, self.embed_dim = int(weight.shape[0]), int(weight.shape[1])
        self.weight = weight
        # Hoisted out of the hot path: transpose the frozen codebook once.
        self.weight_t = jnp.asarray(weight.T)
        # None -> jnp.result_type(x, weight) (PyTorch promotion). Pass e.g.
        # jnp.bfloat16 to halve HBM write bytes when the consumer tolerates it.
        self.out_dtype = out_dtype

    def __call__(self, x):
        return codebook_pallas_wt(x, self.weight_t, out_dtype=self.out_dtype)

    def __repr__(self):
        return self.__class__.__name__ + f"(weight=({self.num_embed}, {self.embed_dim}))"


if __name__ == "__main__":
    key = jax.random.PRNGKey(0)
    k_x, k_w = jax.random.split(key)

    # Small shapes consistent with the module: batch=2, channels(num_embed)=4,
    # spatial=16x16, embed_dim(hidden)=32.
    N, C, H, W = 2, 4, 16, 16
    D = 32
    x = jax.random.normal(k_x, (N, C, H, W), dtype=jnp.float32)
    weight = jax.random.normal(k_w, (C, D), dtype=jnp.float32)

    module = CodebookPallas(weight)
    out = jax.block_until_ready(module(x))

    ref = codebook_reference(x, weight)
    np.testing.assert_allclose(np.asarray(out), np.asarray(ref), rtol=1e-5, atol=1e-5)

    print("KERNEL_OK")
</pallas_src>

<mosaic_0001>
module attributes {stable_mosaic.version = 11 : i64} {
  func.func @_codebook_kernel(%arg0: i32, %arg1: i32, %arg2: memref<32x4xf32, #tpu.memory_space<vmem>>, %arg3: memref<1x4x256xf32, #tpu.memory_space<vmem>>, %arg4: memref<1x32x256xf32, #tpu.memory_space<vmem>>) attributes {dimension_semantics = [#tpu.dimension_semantics<parallel>, #tpu.dimension_semantics<parallel>], iteration_bounds = array<i64: 2, 1>, scalar_prefetch = 0 : i64, scratch_operands = 0 : i64, tpu.core_type = #tpu.core_type<tc>, window_params = [{pipeline_mode = #tpu.pipeline_mode<synchronous>, transform_indices = @transform_0, window_bounds = array<i64: 32, 4>}, {transform_indices = @transform_1, window_bounds = array<i64: 1, 4, 256>}, {transform_indices = @transform_2, window_bounds = array<i64: 1, 32, 256>}]} {
    %c0 = arith.constant 0 : index
    %c0_0 = arith.constant 0 : index
    %0 = vector.load %arg2[%c0, %c0_0] : memref<32x4xf32, #tpu.memory_space<vmem>>, vector<32x4xf32>
    %c0_1 = arith.constant 0 : index
    %c0_2 = arith.constant 0 : index
    %c0_3 = arith.constant 0 : index
    %1 = vector.load %arg3[%c0_1, %c0_2, %c0_3] : memref<1x4x256xf32, #tpu.memory_space<vmem>>, vector<1x4x256xf32>
    %2 = vector.shape_cast %1 : vector<1x4x256xf32> to vector<4x256xf32>
    %cst = arith.constant dense<0.000000e+00> : vector<32x256xf32>
    %3 = tpu.matmul %0, %2, %cst {dimension_numbers = #tpu.dot_dimension_numbers<[1], [0], [0], [1], [0, 0, 1, 1], [], []>} : vector<32x4xf32>, vector<4x256xf32>, vector<32x256xf32> -> vector<32x256xf32>
    %c0_4 = arith.constant 0 : index
    %c0_5 = arith.constant 0 : index
    %c0_6 = arith.constant 0 : index
    %4 = vector.load %arg4[%c0_4, %c0_5, %c0_6] : memref<1x32x256xf32, #tpu.memory_space<vmem>>, vector<1x32x256xf32>
    %5 = vector.shape_cast %4 : vector<1x32x256xf32> to vector<32x256xf32>
    %6 = vector.shape_cast %3 : vector<32x256xf32> to vector<1x32x256xf32>
    tpu.vector_store %arg4[%c0_4, %c0_5, %c0_6], %6 {strides = array<i32>} : memref<1x32x256xf32, #tpu.memory_space<vmem>>, vector<1x32x256xf32>,
    return
  }
  func.func @transform_0(%arg0: i32, %arg1: i32) -> (i32, i32) {
    %c0_i32 = arith.constant 0 : i32
    %c0_i32_0 = arith.constant 0 : i32
    %c0_i32_1 = arith.constant 0 : i32
    return %c0_i32, %c0_i32_0 : i32, i32
  }
  func.func @transform_1(%arg0: i32, %arg1: i32) -> (i32, i32, i32) {
    %c0_i32 = arith.constant 0 : i32
    %c0_i32_0 = arith.constant 0 : i32
    return %arg0, %c0_i32, %arg1 : i32, i32, i32
  }
  func.func @transform_2(%arg0: i32, %arg1: i32) -> (i32, i32, i32) {
    %c0_i32 = arith.constant 0 : i32
    %c0_i32_0 = arith.constant 0 : i32
    return %arg0, %c0_i32, %arg1 : i32, i32, i32
  }
}

</mosaic_0001>

<bundles_post_ra>
// kernel: tpu_custom_call.1
= control target key start
LH: loop header
LB: loop body
LE: loop exit
PB: predicated region body
PF: predicated region fallthrough
CT: control target
= control target key end

     0   :  { %7 = vsyncpa [#allocation3], 0  ;;  %s698_s0 = inlined_call_operand.vmem [shape: f32[32,4], index: 0, kind: input, shape index: {}]   ;;  %s699_s1 = inlined_call_operand.vmem [shape: f32[2,4,256], index: 1, kind: input, shape index: {}]   ;;  %s700_s2 = inlined_call_operand.hbm [shape: f32[2,32,256], index: 2, kind: output, shape index: {}]  }
   0x1   :  { %9 = vsyncpa [#allocation3 + $0x1], 0  ;;  %s571_s9 = smov 0   ;;  %s573_s10 = smov 0  }
   0x2   :  { %s575_s11 = smov 0   ;;  %s577_s12 = smov 0  }
   0x3   :  { %s579_s13 = smov 0   ;;  %s581_s14 = smov 0  }
   0x4 LB: > { %s390_s15 = sadd.s32 4294967295, %s550_s14   ;;  %s391_s16 = sadd.s32 4294967294, %s550_s14   ;;  %s550_s14 = sphi %s581_s14, %s15_s14   ;;  %s546_s13 = sphi %s579_s13, %s707_s13   ;;  %s542_s12 = sphi %s577_s12, %s706_s12   ;;  %s538_s11 = sphi %s575_s11, %s705_s11   ;;  %s534_s10 = sphi %s573_s10, %s704_s10   ;;  %s530_s9 = sphi %s571_s9, %s703_s9  }
   0x5   : > { %s27_s17 = sadd.s32 1, %s546_s13  ;;  %s85_s18 = sadd.s32 1, %s538_s11 }
   0x6   : > { %p29_p0 = scmp.ge.s32.totalorder %s27_s17, 2  ;;  %p95_p1 = scmp.ne.s32.totalorder %s538_s11, %s534_s10 }
   0x7   : > { %p96_p2 = scmp.eq.s32.totalorder %s390_s15, 1  ;;  %p101_p3 = scmp.ne.s32.totalorder %s534_s10, %s530_s9 }
   0x8   : > { %s709_s17 = smov (%p29_p0, %s27_s17), 0  ;;  %p102_p5 = scmp.eq.s32.totalorder %s391_s16, 1 }
   0x9   : > { %p611_p4 = por %p96_p2, %p95_p1  ;;  %s80_s20 = ssub.s32 %s546_s13, %s709_s17 }
   0xa   : > { %p394_p6 = scmp.ge.s32.totalorder %s550_s14, 1  ;;  %p83_p7 = scmp.eq.s32.totalorder %s80_s20, 0 }
   0xb   : > { %p618_p8 = por %p102_p5, %p101_p3  ;;  %p136_p9 = scmp.lt.s32.totalorder %s550_s14, 3 }
   0xc   : > { %s624_s22 = scalar_select %p83_p7, %s538_s11, %s85_s18  }
   0xd   : > { %p137_p10 = pnand %p394_p6, %p136_p9 }
   0xe   : > { %p163_p11 = scmp.lt.s32.totalorder (!%p137_p10), %s542_s12, 1  ;;  %v552_v0 = vmov (!%p137_p10), 0.0   ;;  %vm193_vm0 = vcmask (!%p137_p10), 1043456   ;;  %v173_v3 = vld [vmem:[%s698_s0] sm:$0xff] (!%p137_p10)  ;;  %vm180_vm1 = vcmask (!%p137_p10), 31744   ;;  %v175_v4 = vld [vmem:[%s698_s0 + $0x10] sm:$0xff] (!%p137_p10) }
   0xf   : > { %140 = sbr.rel (%p137_p10) target bundleno = 263 (0x107), region = 28  ;;  %262 = vmatprep.mubr.f32.mxu0 (!%p137_p10), %v552_v0  ;;  %274 = vmatprep.mubr.f32.mxu1 (!%p137_p10), %v552_v0  ;;  %v174_v5 = vld [vmem:[%s698_s0 + $0x8] sm:$0xff] (!%p137_p10)  ;;  %v176_v6 = vld [vmem:[%s698_s0 + $0x18] sm:$0xff] (!%p137_p10)  ;;  %s159_s8 = sand.u32 (!%p137_p10), 1, %s534_s10  }
  0x10   : > { %s395_s15 = sshll.u32 (!%p137_p10), %s159_s8, 6  ;;  %s410_s20 = sshll.u32 (!%p137_p10), %s542_s12, 10 }
  0x11   : > { %s161_s16 = scalar_lea.vmem (!%p137_p10), [#allocation2], %s395_s15  ;;  %s650_s25 = scalar_lea.hbm (!%p137_p10), %s700_s2, %s410_s20 }
  0x12   : > { %s311_s18 = sshll.u32 (!%p137_p10), %s161_s16, 4  ;;  %s645_s18 = int_to_ptr.vmem [resolvable:$true] %s311_s18 }
  0x13   : > { %s472_s26 = scalar_lea.vmem (!%p137_p10), %s645_s18, 1024 }
  0x14   : > { %p473_p12 = scmp.ne.s32.totalorder (!%p137_p10), %s645_s18, %s472_s26 }
  0x16   : > { %s164_s23 = scalar_select %p163_p11, %s542_s12, 1 }
  0x17   : > { %s652_s12 = scalar_lea.sflag [#allocation3], %s159_s8  ;;  %p474_p13 = pnand %p473_p12, %p611_p4 }
  0x18   : > { %s409_s24 = sshll.u32 %s164_s23, 3 }
  0x19   : > { %s170_s27 = scalar_lea.vmem %s699_s1, %s409_s24  ;;  %p475_p0 = pneg %p474_p13 }
  0x1a   : > { %v177_v1 = vld [vmem:[%s170_s27] sm:$0xff]  ;;  %s553_s27 = smov [#allocation2]  }
  0x1b   : > { %v179_v2 = vcombine.high %v177_v1, %v177_v1  ;;  %s476_s28 = sshll.u32 %s553_s27, 4  ;;  %s477_s28 = int_to_ptr.vmem [resolvable:$false] %s476_s28 }
  0x1c   : > { %s478_s29 = scalar_lea.vmem %s477_s28, 2048  ;;  %p479_p1 = scmp.lt.s32.totalorder %s645_s18, %s477_s28 }
  0x1d   : > { %398 = vmatprep.subr.msk.mxu0 %vm193_vm0, %v179_v2  ;;  %411 = vmatprep.subr.msk.mxu1 %vm193_vm0, %v179_v2  ;;  %p480_p2 = scmp.lt.s32.totalorder %s478_s29, %s472_s26 }
  0x1e   : > { %399 = vmatpush1.msk.msra.mxu0 %vm193_vm0, %v177_v1  ;;  %412 = vmatpush1.msk.msra.mxu1 %vm193_vm0, %v177_v1 }
  0x1f   : > { %400 = vmatmul.mubr.msk.f32.vlgmr.msra.gmra.mrb[0].mxu0 %vm180_vm1, %v173_v3  ;;  %402 = vmatmul.mubr.msk.f32.vlgmr.msra.gmra.mrb[0].mxu1 %vm180_vm1, %v175_v4  ;;  %p481_p3 = por %p480_p2, %p479_p1 }
  0x20   : > { %268 = vmatprep.mubr.f32.mxu0 %v552_v0  ;;  %280 = vmatprep.mubr.f32.mxu1 %v552_v0 }
  0x21   : > { %p482_p5 = pnand %p481_p3, %p475_p0 }
  0x23   : > { %401 = vmatmul.mubr.msk.f32.gmra.mrb[2].mxu0 %vm180_vm1, %v174_v5  ;;  %403 = vmatmul.mubr.msk.f32.gmra.mrb[2].mxu1 %vm180_vm1, %v176_v6 }
  0xf2   : > { %v264_v7 = vpop.f32.mrb[0].mxu0  ;;  %v276_v8 = vpop.f32.mrb[0].mxu1 }
  0xf3   : > { %287 = vst [vmem:[%s161_s16] sm:$0xff] %v264_v7  ;;  %291 = vst [vmem:[%s161_s16 + $0x20] sm:$0xff] %v276_v8  ;;  %v266_v9 = vpop.f32.mrb[1].mxu0  ;;  %v278_v10 = vpop.f32.mrb[1].mxu1 }
  0xf4   : > { %288 = vst [vmem:[%s161_s16 + $0x8] sm:$0xff] %v266_v9  ;;  %292 = vst [vmem:[%s161_s16 + $0x28] sm:$0xff] %v278_v10 }
  0xf6   : > { %v270_v11 = vpop.f32.mrb[2].mxu0  ;;  %v282_v12 = vpop.f32.mrb[2].mxu1 }
  0xf7   : > { %289 = vst [vmem:[%s161_s16 + $0x10] sm:$0xff] %v270_v11  ;;  %293 = vst [vmem:[%s161_s16 + $0x30] sm:$0xff] %v282_v12  ;;  %v272_v13 = vpop.f32.mrb[3].mxu0  ;;  %v284_v14 = vpop.f32.mrb[3].mxu1 }
  0xf8   : > { %290 = vst [vmem:[%s161_s16 + $0x18] sm:$0xff] %v272_v13  ;;  %294 = vst [vmem:[%s161_s16 + $0x38] sm:$0xff] %v284_v14 }
  0xf9   : > { %485 = shalt.err (!%p482_p5)
}
  0xfa   : > { %s486_s30 = scalar_lea.hbm %s650_s25, 1024  ;;  %s490_s5 = scalar_lea.hbm %s700_s2, 2048 }
  0xfb   : > { %p487_p6 = scmp.ne.s32.totalorder %s650_s25, %s486_s30  ;;  %p491_p10 = scmp.lt.u32.totalorder %s650_s25, %s700_s2 }
  0xfc   : > { %p492_p11 = scmp.lt.u32.totalorder %s490_s5, %s486_s30  ;;  %p494_p13 = scmp.lt.u32.totalorder %s486_s30, %s650_s25 }
  0xfd   : > { %p488_p7 = pnand %p487_p6, %p611_p4 }
  0xfe   : > { %p493_p12 = por %p492_p11, %p491_p10 }
  0xff   : > { %p489_p9 = pneg %p488_p7 }
 0x100   : > { %p495_p0 = por %p494_p13, %p493_p12 }
 0x102   : > { %p496_p1 = pnand %p495_p0, %p489_p9 }
 0x104   : > { %499 = shalt.err (!%p496_p1)
}
 0x105   : > { %s554_s8 = smov 256   ;;  %s555_s15 = smov 16  }
 0x106   : > { %413 = dma.vmem_to_hbm [thread:$0]  (%p611_p4), %s645_s18, 1024, %s650_s25, %s652_s12, %s554_s8, %s554_s8, %s555_s15  }
 0x107 PF: > { %p419_p2 = scmp.ge.s32.totalorder %s550_s14, 2  ;;  %s326_s16 = sand.u32 1, %s530_s9  }
 0x108   : > { %s327_s20 = scalar_lea.sflag [#allocation3], %s326_s16 }
 0x109   : > { %p416_p3 = pnand %p419_p2, %p618_p8 }
 0x10b   : > { %525 = dma.done.wait (!%p416_p3), %s327_s20, 1024  }
 0x10c   : > { %527 = vsyncadd (!%p416_p3), %s327_s20, 4294966272  ;;  %s15_s14 = sadd.s32 1, %s550_s14   ;;  %s703_s9 = smov %s534_s10 }
 0x10d   : > { %p12_p5 = scmp.ge.s32.totalorder %s15_s14, 4   ;;  %s704_s10 = smov %s538_s11 }
 0x10e   : > { %s705_s11 = smov %s624_s22  ;;  %s706_s12 = smov %s546_s13 }
 0x10f   : > { %s707_s13 = smov %s709_s17  ;;  %14 = sbr.rel (!%p12_p5) target bundleno = 4 (0x4), region = 63 }
 0x116   :  { %332 = vsyncpa [#allocation3], 1 }
 0x117   :  { %334 = vsyncpa [#allocation3 + $0x1], 1 }

</bundles_post_ra>
